<compile_context>
chip_gen: v6e
topology: v6e:2x2x1
jax: 0.10.0
libtpu: 0.0.40
codegen_flags: <defaults>
</compile_context>

<pallas_src>
from functools import partial

import jax
import jax.numpy as jnp
import numpy as np
from jax.experimental import pallas as pl
from jax.experimental.pallas import tpu as pltpu


def encoder_kernel(tok_ref, table_ref, out_ref):
    """One grid step: `tr` output rows, each packing G consecutive tokens.

    tok_ref   : (tr, G)      int32     -- G consecutive token ids per packed row
    table_ref : (V, Hp)      f32/bf16  -- fused Embedding @ Linear.T table (lane padded)
    out_ref   : (tr, G*Hp)   f32       -- lane-dense packed output
    """
    tok = tok_ref[...]
    tr, g = tok.shape
    v = table_ref.shape[0]
    table = table_ref[...]
    col = jax.lax.broadcasted_iota(jnp.int32, (tr, v), 1)   # hoisted out of loop

    outs = []
    for s in range(g):                    # g <= 128/H, small -> static unroll
        t = tok[:, s:s + 1]                                  # (tr, 1)
        # One-hot row select; negative / OOB ids (incl. -1 padding) -> zero row.
        # TODO(synk): PyTorch nn.Embedding raises on OOB ids; here they are masked.
        onehot = ((col == t) & (t >= 0) & (t < v)).astype(table.dtype)
        # f32 x f32 goes through Mosaic's full-precision MXU path (verified by the
        # 1e-5 check in __main__); bf16 x bf16 (use_bf16_mxu) runs at native rate.
        outs.append(jnp.dot(onehot, table, preferred_element_type=jnp.float32))

    out_ref[...] = outs[0] if g == 1 else jnp.concatenate(outs, axis=-1)


def _round_up(x, m):
    return (x + m - 1) // m * m


def _vmem_budget_bytes():
    """Generation-aware VMEM planning budget (v5e/v6e: 128 MiB phys, v7x: 64 MiB)."""
    try:
        phys = int(pltpu.get_tpu_info().vmem_capacity_bytes)
    except Exception:
        phys = 64 << 20                       # smallest current generation (v7x)
    return int(min(phys // 2, 32 << 20))


def _pick_row_tile(budget, V, G, Hp, table_bytes, target=512):
    """Largest multiple-of-8 row tile <= target that fits the VMEM budget.

    Per-row cost (f32, conservative): token ids (x2 pipeline buffers), packed
    output (x2 buffers), one (1, V) one-hot slice intermediate, one dot result.
    The table is charged for two buffers (worst case if single-buffering is
    unavailable)."""
    per_row = 2 * (G * 4) + 2 * (G * Hp * 4) + V * 4 + G * Hp * 4
    avail = max(budget - 2 * table_bytes, per_row * 8)
    # TODO(synk): for vocabularies whose fused table does not fit VMEM, switch to
    # a scalar-prefetch / pl.Element row gather instead of a resident table.
    return int(max(8, min(target, (avail // per_row) // 8 * 8)))


@partial(jax.jit, static_argnames=("use_bf16_mxu", "single_buffer_table"))
def _encoder_forward_impl(sent1, sent2, emb_table, linear_weight,
                          use_bf16_mxu=False, single_buffer_table=True):
    B, L = sent1.shape
    assert sent2.shape == (B, L)
    V, E = emb_table.shape
    H, E2 = linear_weight.shape
    assert E2 == E

    # --- Algebraic fusion: Embedding followed by bias-free Linear -> (V, H) ---
    fused = jnp.dot(emb_table, linear_weight.T,
                    preferred_element_type=jnp.float32,
                    precision=jax.lax.Precision.HIGHEST)            # (V, H)

    # --- Lane-dense geometry: pack tokens or pad the lane axis to 128*k --------
    if H <= 128 and 128 % H == 0:
        G, Hp = 128 // H, H              # pack G tokens per 128-lane output row
    else:
        G, Hp = 1, _round_up(H, 128)     # keep stores unmasked via lane padding
    if Hp > H:
        fused = jnp.pad(fused, ((0, 0), (0, Hp - H)))
    table = fused.astype(jnp.bfloat16) if use_bf16_mxu else fused
    table_bytes = V * Hp * table.dtype.itemsize
    GH = G * Hp

    # --- Flatten BOTH sentences into one row axis; pad; pack G tokens per row --
    Ntok = 2 * B * L
    tokens = jnp.concatenate([sent1.reshape(-1), sent2.reshape(-1)]).astype(jnp.int32)

    budget = _vmem_budget_bytes()
    tr = _pick_row_tile(budget, V, G, Hp, table_bytes)
    R_raw = pl.cdiv(Ntok, G)
    if R_raw <= tr:
        tr = R_raw
        R = R_raw
    else:
        R = _round_up(R_raw, tr)
    Npad = R * G
    if Npad > Ntok:
        tokens = jnp.concatenate(
            [tokens, jnp.full((Npad - Ntok,), -1, jnp.int32)])      # -1 -> zero rows
    tokens = tokens.reshape(R, G)

    # --- Single-buffer the grid-invariant table block (guarded fallback) -------
    table_spec_kwargs = {}
    if single_buffer_table:
        table_spec_kwargs["pipeline_mode"] = pl.Buffered(1)
    in_specs = [
        pl.BlockSpec((tr, G), lambda r: (r, 0)),                    # token ids
        pl.BlockSpec((V, Hp), lambda r: (0, 0), **table_spec_kwargs),  # fused table
    ]

    out = pl.pallas_call(
        encoder_kernel,
        out_shape=jax.ShapeDtypeStruct((R, GH), jnp.float32),
        grid=(R // tr,),                       # 1-D grid over row tiles
        in_specs=in_specs,
        out_specs=pl.BlockSpec((tr, GH), lambda r: (r, 0)),
        compiler_params=pltpu.CompilerParams(
            dimension_semantics=("parallel",),
            vmem_limit_bytes=budget),
        cost_estimate=pl.CostEstimate(
            flops=2 * R * G * V * Hp,          # actual MXU work, not just useful work
            transcendentals=0,
            bytes_accessed=table_bytes + R * G * 4 + R * GH * 4),
    )(tokens, table)

    out = out.reshape(R * G, Hp)[:Ntok, :H].reshape(2, B, L, H)
    return out[0], out[1]


_SINGLE_BUFFER_TABLE_OK = None   # probed lazily on the first call


def encoder_forward(sent1, sent2, emb_table, linear_weight, use_bf16_mxu=False):
    """Mirrors encoder.forward(sent1, sent2) -> ((B, L, H), (B, L, H)).

    sent1, sent2  : (B, L) int token ids
    emb_table     : (V, E) f32   (nn.Embedding.weight)
    linear_weight : (H, E) f32   (nn.Linear.weight, bias=False)
    """
    global _SINGLE_BUFFER_TABLE_OK
    if _SINGLE_BUFFER_TABLE_OK is None:
        try:
            out = _encoder_forward_impl(sent1, sent2, emb_table, linear_weight,
                                        use_bf16_mxu=use_bf16_mxu,
                                        single_buffer_table=True)
            jax.block_until_ready(out)
            _SINGLE_BUFFER_TABLE_OK = True
            return out
        except Exception:
            # Installed jax/Mosaic rejected pl.Buffered(1) for this BlockSpec;
            # fall back to the default (double-buffered, but small) table block.
            _SINGLE_BUFFER_TABLE_OK = False
    return _encoder_forward_impl(sent1, sent2, emb_table, linear_weight,
                                 use_bf16_mxu=use_bf16_mxu,
                                 single_buffer_table=_SINGLE_BUFFER_TABLE_OK)


if __name__ == "__main__":
    # Module hyper-parameters (small, consistent with the forward pass).
    num_embeddings = 32   # vocabulary size V
    embedding_size = 16   # E
    hidden_size = 32      # H
    para_init = 0.01

    batch_size, seq_len = 2, 16

    key = jax.random.PRNGKey(0)
    k_emb, k_w, k_s1, k_s2 = jax.random.split(key, 4)

    # nn.Embedding default init: N(0, 1)
    emb_table = jax.random.normal(
        k_emb, (num_embeddings, embedding_size), dtype=jnp.float32)
    # nn.Linear weight (H, E) ~ N(0, para_init), bias-free.
    w = para_init * jax.random.normal(
        k_w, (hidden_size, embedding_size), dtype=jnp.float32)

    sent1 = jax.random.randint(
        k_s1, (batch_size, seq_len), 0, num_embeddings, dtype=jnp.int32)
    sent2 = jax.random.randint(
        k_s2, (batch_size, seq_len), 0, num_embeddings, dtype=jnp.int32)

    # --- f32 path (accurate) --------------------------------------------------
    out1, out2 = encoder_forward(sent1, sent2, emb_table, w)
    jax.block_until_ready((out1, out2))

    # Pure-JAX reference (same math as the PyTorch module: embed then linear).
    ref1 = jnp.einsum("ble,he->blh", emb_table[sent1], w,
                      precision=jax.lax.Precision.HIGHEST)
    ref2 = jnp.einsum("ble,he->blh", emb_table[sent2], w,
                      precision=jax.lax.Precision.HIGHEST)

    assert out1.shape == (batch_size, seq_len, hidden_size)
    assert out2.shape == (batch_size, seq_len, hidden_size)
    np.testing.assert_allclose(np.asarray(out1), np.asarray(ref1),
                               rtol=1e-5, atol=1e-5)
    np.testing.assert_allclose(np.asarray(out2), np.asarray(ref2),
                               rtol=1e-5, atol=1e-5)

    # --- bf16 MXU path (flag-gated; looser tolerance by construction) ----------
    b1, b2 = encoder_forward(sent1, sent2, emb_table, w, use_bf16_mxu=True)
    jax.block_until_ready((b1, b2))
    np.testing.assert_allclose(np.asarray(b1), np.asarray(ref1),
                               rtol=5e-2, atol=5e-3)
    np.testing.assert_allclose(np.asarray(b2), np.asarray(ref2),
                               rtol=5e-2, atol=5e-3)

    print("KERNEL_OK")
</pallas_src>

<mosaic_0001>
module attributes {stable_mosaic.version = 11 : i64} {
  func.func @encoder_kernel(%arg0: i32, %arg1: memref<16x4xi32, #tpu.memory_space<vmem>>, %arg2: memref<32x32xf32, #tpu.memory_space<vmem>>, %arg3: memref<16x128xf32, #tpu.memory_space<vmem>>) attributes {dimension_semantics = [#tpu.dimension_semantics<parallel>], iteration_bounds = array<i64: 1>, scalar_prefetch = 0 : i64, scratch_operands = 0 : i64, tpu.core_type = #tpu.core_type<tc>, window_params = [{transform_indices = @transform_0, window_bounds = array<i64: 16, 4>}, {pipeline_mode = #tpu.pipeline_mode<synchronous>, transform_indices = @transform_1, window_bounds = array<i64: 32, 32>}, {transform_indices = @transform_2, window_bounds = array<i64: 16, 128>}]} {
    %c0 = arith.constant 0 : index
    %c0_0 = arith.constant 0 : index
    %0 = vector.load %arg1[%c0, %c0_0] : memref<16x4xi32, #tpu.memory_space<vmem>>, vector<16x4xi32>
    %c0_1 = arith.constant 0 : index
    %c0_2 = arith.constant 0 : index
    %1 = vector.load %arg2[%c0_1, %c0_2] : memref<32x32xf32, #tpu.memory_space<vmem>>, vector<32x32xf32>
    %2 = tpu.iota {dimensions = array<i32: 1>} : vector<16x32xi32>
    %3 = vector.extract_strided_slice %0 {offsets = [0, 0], sizes = [16, 1], strides = [1, 1]} : vector<16x4xi32> to vector<16x1xi32>
    %4 = vector.broadcast %3 : vector<16x1xi32> to vector<16x32xi32>
    %5 = arith.cmpi eq, %2, %4 : vector<16x32xi32>
    %c0_i32 = arith.constant 0 : i32
    %6 = vector.broadcast %c0_i32 : i32 to vector<16x1xi32>
    %7 = arith.cmpi sge, %3, %6 : vector<16x1xi32>
    %8 = vector.broadcast %7 : vector<16x1xi1> to vector<16x32xi1>
    %9 = arith.andi %5, %8 : vector<16x32xi1>
    %c32_i32 = arith.constant 32 : i32
    %10 = vector.broadcast %c32_i32 : i32 to vector<16x1xi32>
    %11 = arith.cmpi slt, %3, %10 : vector<16x1xi32>
    %12 = vector.broadcast %11 : vector<16x1xi1> to vector<16x32xi1>
    %13 = arith.andi %9, %12 : vector<16x32xi1>
    %14 = arith.extui %13 : vector<16x32xi1> to vector<16x32xi32>
    %15 = arith.sitofp %14 : vector<16x32xi32> to vector<16x32xf32>
    %cst = arith.constant dense<0.000000e+00> : vector<16x32xf32>
    %16 = tpu.matmul %15, %1, %cst {dimension_numbers = #tpu.dot_dimension_numbers<[1], [0], [0], [1], [0, 0, 1, 1], [], []>} : vector<16x32xf32>, vector<32x32xf32>, vector<16x32xf32> -> vector<16x32xf32>
    %17 = vector.extract_strided_slice %0 {offsets = [0, 1], sizes = [16, 1], strides = [1, 1]} : vector<16x4xi32> to vector<16x1xi32>
    %18 = vector.broadcast %17 : vector<16x1xi32> to vector<16x32xi32>
    %19 = arith.cmpi eq, %2, %18 : vector<16x32xi32>
    %c0_i32_3 = arith.constant 0 : i32
    %20 = vector.broadcast %c0_i32_3 : i32 to vector<16x1xi32>
    %21 = arith.cmpi sge, %17, %20 : vector<16x1xi32>
    %22 = vector.broadcast %21 : vector<16x1xi1> to vector<16x32xi1>
    %23 = arith.andi %19, %22 : vector<16x32xi1>
    %c32_i32_4 = arith.constant 32 : i32
    %24 = vector.broadcast %c32_i32_4 : i32 to vector<16x1xi32>
    %25 = arith.cmpi slt, %17, %24 : vector<16x1xi32>
    %26 = vector.broadcast %25 : vector<16x1xi1> to vector<16x32xi1>
    %27 = arith.andi %23, %26 : vector<16x32xi1>
    %28 = arith.extui %27 : vector<16x32xi1> to vector<16x32xi32>
    %29 = arith.sitofp %28 : vector<16x32xi32> to vector<16x32xf32>
    %cst_5 = arith.constant dense<0.000000e+00> : vector<16x32xf32>
    %30 = tpu.matmul %29, %1, %cst_5 {dimension_numbers = #tpu.dot_dimension_numbers<[1], [0], [0], [1], [0, 0, 1, 1], [], []>} : vector<16x32xf32>, vector<32x32xf32>, vector<16x32xf32> -> vector<16x32xf32>
    %31 = vector.extract_strided_slice %0 {offsets = [0, 2], sizes = [16, 1], strides = [1, 1]} : vector<16x4xi32> to vector<16x1xi32>
    %32 = vector.broadcast %31 : vector<16x1xi32> to vector<16x32xi32>
    %33 = arith.cmpi eq, %2, %32 : vector<16x32xi32>
    %c0_i32_6 = arith.constant 0 : i32
    %34 = vector.broadcast %c0_i32_6 : i32 to vector<16x1xi32>
    %35 = arith.cmpi sge, %31, %34 : vector<16x1xi32>
    %36 = vector.broadcast %35 : vector<16x1xi1> to vector<16x32xi1>
    %37 = arith.andi %33, %36 : vector<16x32xi1>
    %c32_i32_7 = arith.constant 32 : i32
    %38 = vector.broadcast %c32_i32_7 : i32 to vector<16x1xi32>
    %39 = arith.cmpi slt, %31, %38 : vector<16x1xi32>
    %40 = vector.broadcast %39 : vector<16x1xi1> to vector<16x32xi1>
    %41 = arith.andi %37, %40 : vector<16x32xi1>
    %42 = arith.extui %41 : vector<16x32xi1> to vector<16x32xi32>
    %43 = arith.sitofp %42 : vector<16x32xi32> to vector<16x32xf32>
    %cst_8 = arith.constant dense<0.000000e+00> : vector<16x32xf32>
    %44 = tpu.matmul %43, %1, %cst_8 {dimension_numbers = #tpu.dot_dimension_numbers<[1], [0], [0], [1], [0, 0, 1, 1], [], []>} : vector<16x32xf32>, vector<32x32xf32>, vector<16x32xf32> -> vector<16x32xf32>
    %45 = vector.extract_strided_slice %0 {offsets = [0, 3], sizes = [16, 1], strides = [1, 1]} : vector<16x4xi32> to vector<16x1xi32>
    %46 = vector.broadcast %45 : vector<16x1xi32> to vector<16x32xi32>
    %47 = arith.cmpi eq, %2, %46 : vector<16x32xi32>
    %c0_i32_9 = arith.constant 0 : i32
    %48 = vector.broadcast %c0_i32_9 : i32 to vector<16x1xi32>
    %49 = arith.cmpi sge, %45, %48 : vector<16x1xi32>
    %50 = vector.broadcast %49 : vector<16x1xi1> to vector<16x32xi1>
    %51 = arith.andi %47, %50 : vector<16x32xi1>
    %c32_i32_10 = arith.constant 32 : i32
    %52 = vector.broadcast %c32_i32_10 : i32 to vector<16x1xi32>
    %53 = arith.cmpi slt, %45, %52 : vector<16x1xi32>
    %54 = vector.broadcast %53 : vector<16x1xi1> to vector<16x32xi1>
    %55 = arith.andi %51, %54 : vector<16x32xi1>
    %56 = arith.extui %55 : vector<16x32xi1> to vector<16x32xi32>
    %57 = arith.sitofp %56 : vector<16x32xi32> to vector<16x32xf32>
    %cst_11 = arith.constant dense<0.000000e+00> : vector<16x32xf32>
    %58 = tpu.matmul %57, %1, %cst_11 {dimension_numbers = #tpu.dot_dimension_numbers<[1], [0], [0], [1], [0, 0, 1, 1], [], []>} : vector<16x32xf32>, vector<32x32xf32>, vector<16x32xf32> -> vector<16x32xf32>
    %59 = tpu.concatenate %16, %30, %44, %58 in 1 : vector<16x32xf32>, vector<16x32xf32>, vector<16x32xf32>, vector<16x32xf32> -> vector<16x128xf32>
    %c0_12 = arith.constant 0 : index
    %c0_13 = arith.constant 0 : index
    %60 = vector.load %arg3[%c0_12, %c0_13] : memref<16x128xf32, #tpu.memory_space<vmem>>, vector<16x128xf32>
    tpu.vector_store %arg3[%c0_12, %c0_13], %59 {strides = array<i32>} : memref<16x128xf32, #tpu.memory_space<vmem>>, vector<16x128xf32>,
    return
  }
  func.func @transform_0(%arg0: i32) -> (i32, i32) {
    %c0_i32 = arith.constant 0 : i32
    %c0_i32_0 = arith.constant 0 : i32
    return %arg0, %c0_i32 : i32, i32
  }
  func.func @transform_1(%arg0: i32) -> (i32, i32) {
    %c0_i32 = arith.constant 0 : i32
    %c0_i32_0 = arith.constant 0 : i32
    %c0_i32_1 = arith.constant 0 : i32
    return %c0_i32, %c0_i32_0 : i32, i32
  }
  func.func @transform_2(%arg0: i32) -> (i32, i32) {
    %c0_i32 = arith.constant 0 : i32
    %c0_i32_0 = arith.constant 0 : i32
    return %arg0, %c0_i32 : i32, i32
  }
}

module attributes {stable_mosaic.version = 11 : i64} {
  func.func @encoder_kernel(%arg0: i32, %arg1: memref<16x4xi32, #tpu.memory_space<vmem>>, %arg2: memref<32x32xf32, #tpu.memory_space<vmem>>, %arg3: memref<16x128xf32, #tpu.memory_space<vmem>>) attributes {dimension_semantics = [#tpu.dimension_semantics<parallel>], iteration_bounds = array<i64: 1>, scalar_prefetch = 0 : i64, scratch_operands = 0 : i64, tpu.core_type = #tpu.core_type<tc>, window_params = [{transform_indices = @transform_0, window_bounds = array<i64: 16, 4>}, {pipeline_mode = #tpu.pipeline_mode<synchronous>, transform_indices = @transform_1, window_bounds = array<i64: 32, 32>}, {transform_indices = @transform_2, window_bounds = array<i64: 16, 128>}]} {
    %c0 = arith.constant 0 : index
    %c0_0 = arith.constant 0 : index
    %0 = vector.load %arg1[%c0, %c0_0] : memref<16x4xi32, #tpu.memory_space<vmem>>, vector<16x4xi32>
    %c0_1 = arith.constant 0 : index
    %c0_2 = arith.constant 0 : index
    %1 = vector.load %arg2[%c0_1, %c0_2] : memref<32x32xf32, #tpu.memory_space<vmem>>, vector<32x32xf32>
    %2 = tpu.iota {dimensions = array<i32: 1>} : vector<16x32xi32>
    %3 = vector.extract_strided_slice %0 {offsets = [0, 0], sizes = [16, 1], strides = [1, 1]} : vector<16x4xi32> to vector<16x1xi32>
    %4 = vector.broadcast %3 : vector<16x1xi32> to vector<16x32xi32>
    %5 = arith.cmpi eq, %2, %4 : vector<16x32xi32>
    %c0_i32 = arith.constant 0 : i32
    %6 = vector.broadcast %c0_i32 : i32 to vector<16x1xi32>
    %7 = arith.cmpi sge, %3, %6 : vector<16x1xi32>
    %8 = vector.broadcast %7 : vector<16x1xi1> to vector<16x32xi1>
    %9 = arith.andi %5, %8 : vector<16x32xi1>
    %c32_i32 = arith.constant 32 : i32
    %10 = vector.broadcast %c32_i32 : i32 to vector<16x1xi32>
    %11 = arith.cmpi slt, %3, %10 : vector<16x1xi32>
    %12 = vector.broadcast %11 : vector<16x1xi1> to vector<16x32xi1>
    %13 = arith.andi %9, %12 : vector<16x32xi1>
    %14 = arith.extui %13 : vector<16x32xi1> to vector<16x32xi32>
    %15 = arith.sitofp %14 : vector<16x32xi32> to vector<16x32xf32>
    %cst = arith.constant dense<0.000000e+00> : vector<16x32xf32>
    %16 = tpu.matmul %15, %1, %cst {dimension_numbers = #tpu.dot_dimension_numbers<[1], [0], [0], [1], [0, 0, 1, 1], [], []>} : vector<16x32xf32>, vector<32x32xf32>, vector<16x32xf32> -> vector<16x32xf32>
    %17 = vector.extract_strided_slice %0 {offsets = [0, 1], sizes = [16, 1], strides = [1, 1]} : vector<16x4xi32> to vector<16x1xi32>
    %18 = vector.broadcast %17 : vector<16x1xi32> to vector<16x32xi32>
    %19 = arith.cmpi eq, %2, %18 : vector<16x32xi32>
    %c0_i32_3 = arith.constant 0 : i32
    %20 = vector.broadcast %c0_i32_3 : i32 to vector<16x1xi32>
    %21 = arith.cmpi sge, %17, %20 : vector<16x1xi32>
    %22 = vector.broadcast %21 : vector<16x1xi1> to vector<16x32xi1>
    %23 = arith.andi %19, %22 : vector<16x32xi1>
    %c32_i32_4 = arith.constant 32 : i32
    %24 = vector.broadcast %c32_i32_4 : i32 to vector<16x1xi32>
    %25 = arith.cmpi slt, %17, %24 : vector<16x1xi32>
    %26 = vector.broadcast %25 : vector<16x1xi1> to vector<16x32xi1>
    %27 = arith.andi %23, %26 : vector<16x32xi1>
    %28 = arith.extui %27 : vector<16x32xi1> to vector<16x32xi32>
    %29 = arith.sitofp %28 : vector<16x32xi32> to vector<16x32xf32>
    %cst_5 = arith.constant dense<0.000000e+00> : vector<16x32xf32>
    %30 = tpu.matmul %29, %1, %cst_5 {dimension_numbers = #tpu.dot_dimension_numbers<[1], [0], [0], [1], [0, 0, 1, 1], [], []>} : vector<16x32xf32>, vector<32x32xf32>, vector<16x32xf32> -> vector<16x32xf32>
    %31 = vector.extract_strided_slice %0 {offsets = [0, 2], sizes = [16, 1], strides = [1, 1]} : vector<16x4xi32> to vector<16x1xi32>
    %32 = vector.broadcast %31 : vector<16x1xi32> to vector<16x32xi32>
    %33 = arith.cmpi eq, %2, %32 : vector<16x32xi32>
    %c0_i32_6 = arith.constant 0 : i32
    %34 = vector.broadcast %c0_i32_6 : i32 to vector<16x1xi32>
    %35 = arith.cmpi sge, %31, %34 : vector<16x1xi32>
    %36 = vector.broadcast %35 : vector<16x1xi1> to vector<16x32xi1>
    %37 = arith.andi %33, %36 : vector<16x32xi1>
    %c32_i32_7 = arith.constant 32 : i32
    %38 = vector.broadcast %c32_i32_7 : i32 to vector<16x1xi32>
    %39 = arith.cmpi slt, %31, %38 : vector<16x1xi32>
    %40 = vector.broadcast %39 : vector<16x1xi1> to vector<16x32xi1>
    %41 = arith.andi %37, %40 : vector<16x32xi1>
    %42 = arith.extui %41 : vector<16x32xi1> to vector<16x32xi32>
    %43 = arith.sitofp %42 : vector<16x32xi32> to vector<16x32xf32>
    %cst_8 = arith.constant dense<0.000000e+00> : vector<16x32xf32>
    %44 = tpu.matmul %43, %1, %cst_8 {dimension_numbers = #tpu.dot_dimension_numbers<[1], [0], [0], [1], [0, 0, 1, 1], [], []>} : vector<16x32xf32>, vector<32x32xf32>, vector<16x32xf32> -> vector<16x32xf32>
    %45 = vector.extract_strided_slice %0 {offsets = [0, 3], sizes = [16, 1], strides = [1, 1]} : vector<16x4xi32> to vector<16x1xi32>
    %46 = vector.broadcast %45 : vector<16x1xi32> to vector<16x32xi32>
    %47 = arith.cmpi eq, %2, %46 : vector<16x32xi32>
    %c0_i32_9 = arith.constant 0 : i32
    %48 = vector.broadcast %c0_i32_9 : i32 to vector<16x1xi32>
    %49 = arith.cmpi sge, %45, %48 : vector<16x1xi32>
    %50 = vector.broadcast %49 : vector<16x1xi1> to vector<16x32xi1>
    %51 = arith.andi %47, %50 : vector<16x32xi1>
    %c32_i32_10 = arith.constant 32 : i32
    %52 = vector.broadcast %c32_i32_10 : i32 to vector<16x1xi32>
    %53 = arith.cmpi slt, %45, %52 : vector<16x1xi32>
    %54 = vector.broadcast %53 : vector<16x1xi1> to vector<16x32xi1>
    %55 = arith.andi %51, %54 : vector<16x32xi1>
    %56 = arith.extui %55 : vector<16x32xi1> to vector<16x32xi32>
    %57 = arith.sitofp %56 : vector<16x32xi32> to vector<16x32xf32>
    %cst_11 = arith.constant dense<0.000000e+00> : vector<16x32xf32>
    %58 = tpu.matmul %57, %1, %cst_11 {dimension_numbers = #tpu.dot_dimension_numbers<[1], [0], [0], [1], [0, 0, 1, 1], [], []>} : vector<16x32xf32>, vector<32x32xf32>, vector<16x32xf32> -> vector<16x32xf32>
    %59 = tpu.concatenate %16, %30, %44, %58 in 1 : vector<16x32xf32>, vector<16x32xf32>, vector<16x32xf32>, vector<16x32xf32> -> vector<16x128xf32>
    %c0_12 = arith.constant 0 : index
    %c0_13 = arith.constant 0 : index
    %60 = vector.load %arg3[%c0_12, %c0_13] : memref<16x128xf32, #tpu.memory_space<vmem>>, vector<16x128xf32>
    tpu.vector_store %arg3[%c0_12, %c0_13], %59 {strides = array<i32>} : memref<16x128xf32, #tpu.memory_space<vmem>>, vector<16x128xf32>,
    return
  }
  func.func @transform_0(%arg0: i32) -> (i32, i32) {
    %c0_i32 = arith.constant 0 : i32
    %c0_i32_0 = arith.constant 0 : i32
    return %arg0, %c0_i32 : i32, i32
  }
  func.func @transform_1(%arg0: i32) -> (i32, i32) {
    %c0_i32 = arith.constant 0 : i32
    %c0_i32_0 = arith.constant 0 : i32
    %c0_i32_1 = arith.constant 0 : i32
    return %c0_i32, %c0_i32_0 : i32, i32
  }
  func.func @transform_2(%arg0: i32) -> (i32, i32) {
    %c0_i32 = arith.constant 0 : i32
    %c0_i32_0 = arith.constant 0 : i32
    return %arg0, %c0_i32 : i32, i32
  }
}

</mosaic_0001>

<bundles_post_ra>
// kernel: squeeze.2
= control target key start
LH: loop header
LB: loop body
LE: loop exit
PB: predicated region body
PF: predicated region fallthrough
CT: control target
= control target key end

     0   :  { %vm4_vm0 = vcmask 261120   ;;  %s84_s0 = inlined_call_operand.vmem [shape: f32[8,128], index: 0, kind: input, shape index: {}]   ;;  %s85_s1 = inlined_call_operand.hbm [shape: f32[2,16,32], index: 1, kind: output, shape index: {}]  }
   0x1   :  { %v6_v0 = vld [vmem:[%s84_s0] sm:$0xff]  }
   0x2   :  { %2 = vsyncpa [#allocation1], 0  ;;  %s60_s0 = smov 96   ;;  %s61_s8 = smov 32   ;;  %5 = vst.msk [vmem:[#allocation0] ss:$4 sm:$0xff] %vm4_vm0, %v6_v0  }
   0x3   :  { %7 = vrot.lane.b32.xlu0 %v6_v0, %s60_s0  ;;  %19 = vrot.lane.b32.xlu1 %v6_v0, %s61_s8  ;;  %s62_s9 = smov 64   ;;  %s63_s10 = smov [#allocation0]  }
   0x4   :  { %s28_s11 = sshll.u32 %s63_s10, 4  ;;  %s29_s11 = int_to_ptr.vmem [resolvable:$true] %s28_s11 }
   0x5   :  { %s38_s12 = scalar_lea.vmem %s29_s11, 512  ;;  %p43_p1 = scmp.lt.s32.totalorder %s29_s11, %s29_s11 }
   0x6   :  { %p39_p0 = scmp.ne.s32.totalorder %s29_s11, %s38_s12  ;;  %p44_p2 = scmp.lt.s32.totalorder %s38_s12, %s38_s12 }
   0x7   :  { %13 = vrot.lane.b32.xlu0 %v6_v0, %s62_s9 }
   0x8   :  { %p45_p3 = por %p44_p2, %p43_p1 }
   0xa   :  { %p46_p4 = pnand %p45_p3, %p39_p0 }
  0x75   :  { %v8_v1 = vpop.permute.xlu0 %7   ;;  %v20_v2 = vpop.permute.xlu1 %19  }
  0x76   :  { %11 = vst.msk [vmem:[#allocation0 + $0x1] ss:$4 sm:$0xff] %vm4_vm0, %v8_v1   ;;  %23 = vst.msk [vmem:[#allocation0 + $0x3] ss:$4 sm:$0xff] %vm4_vm0, %v20_v2  }
  0x79   :  { %v14_v3 = vpop.permute.xlu0 %13  }
  0x7a   :  { %17 = vst.msk [vmem:[#allocation0 + $0x2] ss:$4 sm:$0xff] %vm4_vm0, %v14_v3  }
  0x7b   :  { %49 = shalt.err (!%p46_p4)
}
  0x7c   :  { %31 = dma.vmem_to_hbm [thread:$0]  %s29_s11, 512, %s85_s1, [#allocation1]  }
  0x7d   :  { %58 = dma.done.wait [#allocation1], 512  }
  0x7e   :  { %59 = vsyncadd [#allocation1], 4294966784 }
  0x7f   :  { %33 = vsyncpa [#allocation1], 1 }

// kernel: _encoder_forward_impl.1
= control target key start
LH: loop header
LB: loop body
LE: loop exit
PB: predicated region body
PF: predicated region fallthrough
CT: control target
= control target key end

     0   :  { %v622_v0 = vmov 0   ;;  %v623_v8 = vmov 1   ;;  %v624_v12 = vmov 2   ;;  %v625_v13 = vmov 3   ;;  %s628_s20 = smov 64   ;;  %s629_s21 = smov 96   ;;  %s745_s0 = inlined_call_operand.vmem [shape: s32[16,4], index: 0, kind: input, shape index: {}]   ;;  %s746_s1 = inlined_call_operand.vmem [shape: f32[32,32], index: 1, kind: input, shape index: {}]   ;;  %s747_s2 = inlined_call_operand.vmem [shape: f32[16,128], index: 2, kind: output, shape index: {}]  }
   0x1   :  { %611 = vset.pattern.permute.xlu1 %v622_v0  ;;  %610 = vset.pattern.permute.xlu0 %v622_v0  ;;  %v648_v1 = vld [vmem:[%s745_s0 + $0x8] sm:$0xff]  ;;  %v11_v2 = vld [vmem:[%s745_s0] sm:$0xff]  ;;  %v658_v5 = vld [vmem:[%s746_s1 + $0x18] sm:$0xff]  ;;  %v17_v14 = vlaneseq  ;;  %vm59_vm8 = vcmask 261120   ;;  %v626_v22 = vmov 0.0  }
   0x2   :  { %23 = vperm.xlu1 %611, %v648_v1   ;;  %20 = vperm.xlu0 %610, %v11_v2   ;;  %vm28_vm0 = vcmp.ge.s32.totalorder %v648_v1, 0  ;;  %vm27_vm1 = vcmp.ge.s32.totalorder %v11_v2, 0  ;;  %vm41_vm2 = vcmp.lt.s32.totalorder %v11_v2, 32  ;;  %v664_v7 = vld [vmem:[%s746_s1 + $0x10] sm:$0xff]  ;;  %vm42_vm3 = vcmp.lt.s32.totalorder %v648_v1, 32  ;;  %v675_v9 = vld [vmem:[%s746_s1 + $0x8] sm:$0xff] }
   0x3   :  { %v30_v3 = vsel %vm28_vm0, 1, %v622_v0  ;;  %v29_v4 = vsel %vm27_vm1, 1, %v622_v0  ;;  %v43_v6 = vsel %vm41_vm2, 1, %v622_v0  ;;  %558 = vmatprep.subr.mxu0 %v658_v5  ;;  %569 = vmatprep.subr.mxu1 %v658_v5  ;;  %v682_v10 = vld [vmem:[%s746_s1] sm:$0xff]  ;;  %v44_v11 = vsel %vm42_vm3, 1, %v622_v0  ;;  %s627_s1 = smov 32  }
   0x4   :  { %559 = vmatpush3.msra.mxu0 %v658_v5  ;;  %570 = vmatpush3.msra.mxu1 %v658_v5  ;;  %v697_v17 = vand.u32 127, %v17_v14 }
   0x5   :  { %560 = vmatprep.subr.mxu0 %v664_v7  ;;  %571 = vmatprep.subr.mxu1 %v664_v7 }
   0x6   :  { %35 = vperm.xlu1 %611, %v30_v3   ;;  %32 = vperm.xlu0 %610, %v29_v4  }
   0x7   :  { %561 = vmatpush3.msra.mxu0 %v664_v7  ;;  %572 = vmatpush3.msra.mxu1 %v664_v7 }
   0x8   :  { %562 = vmatprep.subr.mxu0 %v675_v9  ;;  %573 = vmatprep.subr.mxu1 %v675_v9 }
   0x9   :  { %563 = vmatpush3.msra.mxu0 %v675_v9  ;;  %574 = vmatpush3.msra.mxu1 %v675_v9 }
   0xa   :  { %612 = vset.pattern.permute.xlu1 %v623_v8  ;;  %46 = vperm.xlu0 %610, %v43_v6  }
   0xb   :  { %142 = vperm.xlu1 %612, %v11_v2   ;;  %564 = vmatprep.subr.mxu0 %v682_v10 }
   0xc   :  { %565 = vmatpush3.msra.mxu0 %v682_v10  ;;  %575 = vmatprep.subr.mxu1 %v682_v10 }
   0xd   :  { %580 = vmatprep.subr.mxu0 %v658_v5  ;;  %576 = vmatpush3.msra.mxu1 %v682_v10 }
   0xe   :  { %613 = vset.pattern.permute.xlu0 %v623_v8  ;;  %591 = vmatprep.subr.mxu1 %v658_v5 }
   0xf   :  { %614 = vset.pattern.permute.xlu1 %v622_v0  ;;  %150 = vperm.xlu0 %613, %v29_v4  }
  0x10   :  { %49 = vperm.xlu1 %614, %v44_v11  }
  0x13   :  { %153 = vperm.xlu0 %613, %v30_v3  }
  0x14   :  { %615 = vset.pattern.permute.xlu1 %v623_v8 }
  0x15   :  { %145 = vperm.xlu1 %615, %v648_v1  }
  0x17   :  { %163 = vperm.xlu0 %613, %v44_v11  }
  0x19   :  { %160 = vperm.xlu1 %615, %v43_v6  }
  0x1b   :  { %617 = vset.pattern.permute.xlu0 %v624_v12 }
  0x1c   :  { %263 = vperm.xlu0 %617, %v29_v4  }
  0x1d   :  { %616 = vset.pattern.permute.xlu1 %v624_v12 }
  0x1e   :  { %255 = vperm.xlu1 %616, %v11_v2  }
  0x20   :  { %273 = vperm.xlu0 %617, %v43_v6  }
  0x22   :  { %258 = vperm.xlu1 %616, %v648_v1  }
  0x24   :  { %619 = vset.pattern.permute.xlu0 %v625_v13 }
  0x25   :  { %376 = vperm.xlu0 %619, %v29_v4  }
  0x26   :  { %266 = vperm.xlu1 %616, %v30_v3  }
  0x29   :  { %379 = vperm.xlu0 %619, %v30_v3  }
  0x2a   :  { %618 = vset.pattern.permute.xlu1 %v625_v13 }
  0x2b   :  { %368 = vperm.xlu1 %618, %v11_v2  }
  0x2d   :  { %389 = vperm.xlu0 %619, %v44_v11  }
  0x2f   :  { %620 = vset.pattern.permute.xlu1 %v624_v12 }
  0x30   :  { %276 = vperm.xlu1 %620, %v44_v11  }
  0x34   :  { %621 = vset.pattern.permute.xlu1 %v625_v13 }
  0x35   :  { %371 = vperm.xlu1 %621, %v648_v1  }
  0x39   :  { %386 = vperm.xlu1 %621, %v43_v6  }
  0x7d   :  { %v24_v15 = vpop.permute.xlu1 %23  ;;  %v21_v16 = vpop.permute.xlu0 %20 }
  0x7e   :  { %vm25_vm4 = vcmp.eq.s32.totalorder %v697_v17, %v21_v16  ;;  %vm26_vm11 = vcmp.eq.s32.totalorder %v697_v17, %v24_v15 }
  0x81   :  { %v36_v18 = vpop.permute.xlu1 %35  ;;  %v33_v19 = vpop.permute.xlu0 %32 }
  0x82   :  { %vm37_vm5 = vcmp.eq.s32.totalorder %v33_v19, 1  ;;  %vm38_vm10 = vcmp.eq.s32.totalorder %v36_v18, 1 }
  0x83   :  { %vm39_vm6 = vmand %vm25_vm4, %vm37_vm5 }
  0x84   :  { %vm40_vm12 = vmand %vm26_vm11, %vm38_vm10 }
  0x85   :  { %v47_v20 = vpop.permute.xlu0 %46 }
  0x86   :  { %v143_v21 = vpop.permute.xlu1 %142  ;;  %vm51_vm7 = vcmp.eq.s32.totalorder %v47_v20, 1 }
  0x87   :  { %vm53_vm9 = vmand %vm39_vm6, %vm51_vm7  ;;  %vm147_vm3 = vcmp.eq.s32.totalorder %v697_v17, %v143_v21 }
  0x88   :  { %v518_v23 = vsel %vm53_vm9, 1.0, %v626_v22 }
  0x89   :  { %566 = vmatprep.mubr.msk.f32.mxu0 %vm59_vm8, %v518_v23 }
  0x8a   :  { %v151_v24 = vpop.permute.xlu0 %150 }
  0x8b   :  { %v50_v25 = vpop.permute.xlu1 %49  ;;  %vm155_vm0 = vcmp.eq.s32.totalorder %v151_v24, 1 }
  0x8c   :  { %vm52_vm13 = vcmp.eq.s32.totalorder %v50_v25, 1  ;;  %vm157_vm5 = vmand %vm147_vm3, %vm155_vm0 }
  0x8d   :  { %vm54_vm14 = vmand %vm40_vm12, %vm52_vm13 }
  0x8e   :  { %v519_v26 = vsel %vm54_vm14, 1.0, %v626_v22  ;;  %v154_v27 = vpop.permute.xlu0 %153 }
  0x8f   :  { %vm156_vm15 = vcmp.eq.s32.totalorder %v154_v27, 1  ;;  %567 = vmatmul.mubr.msk.f32.vlgmr.msra.gmra.mxu0 %vm59_vm8, %v519_v26 }
  0x90   :  { %v146_v28 = vpop.permute.xlu1 %145  ;;  %581 = vmatpush3.msra.mxu0 %v658_v5 }
  0x91   :  { %vm148_vm1 = vcmp.eq.s32.totalorder %v697_v17, %v146_v28  ;;  %582 = vmatprep.subr.mxu0 %v664_v7 }
  0x92   :  { %vm158_vm2 = vmand %vm148_vm1, %vm156_vm15  ;;  %v164_v29 = vpop.permute.xlu0 %163  ;;  %583 = vmatpush3.msra.mxu0 %v664_v7 }
  0x93   :  { %vm166_vm4 = vcmp.eq.s32.totalorder %v164_v29, 1  ;;  %584 = vmatprep.subr.mxu0 %v675_v9 }
  0x94   :  { %v161_v30 = vpop.permute.xlu1 %160  ;;  %585 = vmatpush3.msra.mxu0 %v675_v9  ;;  %vm168_vm6 = vmand %vm158_vm2, %vm166_vm4 }
  0x95   :  { %vm165_vm7 = vcmp.eq.s32.totalorder %v161_v30, 1  ;;  %586 = vmatprep.subr.mxu0 %v682_v10  ;;  %v523_v33 = vsel %vm168_vm6, 1.0, %v626_v22 }
  0x96   :  { %vm167_vm9 = vmand %vm157_vm5, %vm165_vm7  ;;  %587 = vmatpush3.msra.mxu0 %v682_v10 }
  0x97   :  { %v264_v31 = vpop.permute.xlu0 %263  ;;  %v522_v32 = vsel %vm167_vm9, 1.0, %v626_v22 }
  0x98   :  { %vm268_vm10 = vcmp.eq.s32.totalorder %v264_v31, 1  ;;  %577 = vmatprep.mubr.msk.f32.mxu1 %vm59_vm8, %v522_v32 }
  0x99   :  { %v256_v34 = vpop.permute.xlu1 %255  ;;  %578 = vmatmul.mubr.msk.f32.vlgmr.msra.gmra.mxu1 %vm59_vm8, %v523_v33 }
  0x9a   :  { %vm260_vm11 = vcmp.eq.s32.totalorder %v697_v17, %v256_v34  ;;  %592 = vmatpush3.msra.mxu1 %v658_v5 }
  0x9b   :  { %vm270_vm12 = vmand %vm260_vm11, %vm268_vm10  ;;  %v274_v35 = vpop.permute.xlu0 %273  ;;  %593 = vmatprep.subr.mxu1 %v664_v7 }
  0x9c   :  { %vm278_vm13 = vcmp.eq.s32.totalorder %v274_v35, 1  ;;  %594 = vmatpush3.msra.mxu1 %v664_v7 }
  0x9d   :  { %vm280_vm14 = vmand %vm270_vm12, %vm278_vm13  ;;  %v259_v36 = vpop.permute.xlu1 %258  ;;  %595 = vmatprep.subr.mxu1 %v675_v9 }
  0x9e   :  { %v526_v37 = vsel %vm280_vm14, 1.0, %v626_v22  ;;  %596 = vmatpush3.msra.mxu1 %v675_v9  ;;  %vm261_vm0 = vcmp.eq.s32.totalorder %v697_v17, %v259_v36 }
  0x9f   :  { %588 = vmatprep.mubr.msk.f32.mxu0 %vm59_vm8, %v526_v37  ;;  %597 = vmatprep.subr.mxu1 %v682_v10 }
  0xa0   :  { %598 = vmatpush3.msra.mxu1 %v682_v10  ;;  %v377_v39 = vpop.permute.xlu0 %376 }
  0xa1   :  { %v267_v38 = vpop.permute.xlu1 %266  ;;  %vm381_vm4 = vcmp.eq.s32.totalorder %v377_v39, 1 }
  0xa2   :  { %vm269_vm15 = vcmp.eq.s32.totalorder %v267_v38, 1 }
  0xa3   :  { %vm271_vm1 = vmand %vm261_vm0, %vm269_vm15  ;;  %vm506_vm15 = vcmask 523264   ;;  %vm509_vm0 = vcmask 785408  }
  0xa4   :  { %v380_v41 = vpop.permute.xlu0 %379 }
  0xa5   :  { %vm382_vm6 = vcmp.eq.s32.totalorder %v380_v41, 1 }
  0xa6   :  { %v369_v40 = vpop.permute.xlu1 %368 }
  0xa7   :  { %vm373_vm5 = vcmp.eq.s32.totalorder %v697_v17, %v369_v40 }
  0xa8   :  { %v390_v45 = vpop.permute.xlu0 %389  ;;  %vm383_vm10 = vmand %vm373_vm5, %vm381_vm4 }
  0xa9   :  { %vm392_vm11 = vcmp.eq.s32.totalorder %v390_v45, 1 }
  0xab   :  { %v277_v42 = vpop.permute.xlu1 %276 }
  0xac   :  { %vm279_vm2 = vcmp.eq.s32.totalorder %v277_v42, 1 }
  0xad   :  { %vm281_vm3 = vmand %vm271_vm1, %vm279_vm2 }
  0xae   :  { %v527_v43 = vsel %vm281_vm3, 1.0, %v626_v22 }
  0xaf   :  { %589 = vmatmul.mubr.msk.f32.vlgmr.msra.gmra.mxu0 %vm59_vm8, %v527_v43 }
  0xb0   :  { %v372_v44 = vpop.permute.xlu1 %371 }
  0xb1   :  { %vm374_vm7 = vcmp.eq.s32.totalorder %v697_v17, %v372_v44 }
  0xb2   :  { %vm384_vm9 = vmand %vm374_vm7, %vm382_vm6 }
  0xb3   :  { %vm394_vm12 = vmand %vm384_vm9, %vm392_vm11 }
  0xb4   :  { %v387_v46 = vpop.permute.xlu1 %386  ;;  %v531_v48 = vsel %vm394_vm12, 1.0, %v626_v22 }
  0xb5   :  { %vm391_vm13 = vcmp.eq.s32.totalorder %v387_v46, 1 }
  0xb6   :  { %vm393_vm14 = vmand %vm383_vm10, %vm391_vm13 }
  0xb7   :  { %v530_v47 = vsel %vm393_vm14, 1.0, %v626_v22 }
  0xb8   :  { %599 = vmatprep.mubr.msk.f32.mxu1 %vm59_vm8, %v530_v47 }
  0xb9   :  { %600 = vmatmul.mubr.msk.f32.vlgmr.msra.gmra.mxu1 %vm59_vm8, %v531_v48 }
 0x14f   :  { %v568_v51 = vpop.f32.mrf.mxu0 }
 0x151   :  { %v132_v52 = vpop.f32.mrf.mxu0 }
 0x159   :  { %v579_v49 = vpop.f32.mrf.mxu1 }
 0x15a   :  { %484 = vrot.lane.b32.xlu0 %v579_v49, %s627_s1 }
 0x15b   :  { %v245_v50 = vpop.f32.mrf.mxu1 }
 0x15c   :  { %482 = vrot.lane.b32.xlu1 %v245_v50, %s627_s1 }
 0x16f   :  { %v590_v53 = vpop.f32.mrf.mxu0 }
 0x170   :  { %492 = vrot.lane.b32.xlu0 %v590_v53, %s628_s20 }
 0x171   :  { %v358_v54 = vpop.f32.mrf.mxu0 }
 0x172   :  { %490 = vrot.lane.b32.xlu1 %v358_v54, %s628_s20 }
 0x179   :  { %v601_v55 = vpop.f32.mrf.mxu1 }
 0x17a   :  { %500 = vrot.lane.b32.xlu0 %v601_v55, %s629_s21 }
 0x17b   :  { %v471_v56 = vpop.f32.mrf.mxu1 }
 0x17c   :  { %498 = vrot.lane.b32.xlu1 %v471_v56, %s629_s21 }
 0x1cc   :  { %v485_v57 = vpop.permute.xlu0 %484 }
 0x1cd   :  { %v505_v61 = vsel %vm59_vm8, %v568_v51, %v485_v57 }
 0x1ce   :  { %v483_v58 = vpop.permute.xlu1 %482 }
 0x1cf   :  { %v504_v0 = vsel %vm59_vm8, %v132_v52, %v483_v58 }
 0x1e2   :  { %v493_v59 = vpop.permute.xlu0 %492 }
 0x1e3   :  { %v508_v62 = vsel %vm506_vm15, %v505_v61, %v493_v59 }
 0x1e4   :  { %v491_v60 = vpop.permute.xlu1 %490 }
 0x1e5   :  { %v507_v2 = vsel %vm506_vm15, %v504_v0, %v491_v60 }
 0x1ec   :  { %v501_v63 = vpop.permute.xlu0 %500 }
 0x1ed   :  { %v511_v1 = vsel %vm509_vm0, %v508_v62, %v501_v63 }
 0x1ee   :  { %513 = vst [vmem:[%s747_s2 + $0x8] sm:$0xff] %v511_v1  ;;  %v499_v3 = vpop.permute.xlu1 %498 }
 0x1ef   :  { %v510_v4 = vsel %vm509_vm0, %v507_v2, %v499_v3 }
 0x1f0   :  { %512 = vst [vmem:[%s747_s2] sm:$0xff] %v510_v4 }

// kernel: squeeze.2
= control target key start
LH: loop header
LB: loop body
LE: loop exit
PB: predicated region body
PF: predicated region fallthrough
CT: control target
= control target key end

     0   :  { %vm4_vm0 = vcmask 261120   ;;  %s84_s0 = inlined_call_operand.vmem [shape: f32[8,128], index: 0, kind: input, shape index: {}]   ;;  %s85_s1 = inlined_call_operand.hbm [shape: f32[2,16,32], index: 1, kind: output, shape index: {}]  }
   0x1   :  { %v6_v0 = vld [vmem:[%s84_s0] sm:$0xff]  }
   0x2   :  { %2 = vsyncpa [#allocation1], 0  ;;  %s60_s0 = smov 96   ;;  %s61_s8 = smov 32   ;;  %5 = vst.msk [vmem:[#allocation0] ss:$4 sm:$0xff] %vm4_vm0, %v6_v0  }
   0x3   :  { %7 = vrot.lane.b32.xlu0 %v6_v0, %s60_s0  ;;  %19 = vrot.lane.b32.xlu1 %v6_v0, %s61_s8  ;;  %s62_s9 = smov 64   ;;  %s63_s10 = smov [#allocation0]  }
   0x4   :  { %s28_s11 = sshll.u32 %s63_s10, 4  ;;  %s29_s11 = int_to_ptr.vmem [resolvable:$true] %s28_s11 }
   0x5   :  { %s38_s12 = scalar_lea.vmem %s29_s11, 512  ;;  %p43_p1 = scmp.lt.s32.totalorder %s29_s11, %s29_s11 }
   0x6   :  { %p39_p0 = scmp.ne.s32.totalorder %s29_s11, %s38_s12  ;;  %p44_p2 = scmp.lt.s32.totalorder %s38_s12, %s38_s12 }
   0x7   :  { %13 = vrot.lane.b32.xlu0 %v6_v0, %s62_s9 }
   0x8   :  { %p45_p3 = por %p44_p2, %p43_p1 }
   0xa   :  { %p46_p4 = pnand %p45_p3, %p39_p0 }
  0x75   :  { %v8_v1 = vpop.permute.xlu0 %7   ;;  %v20_v2 = vpop.permute.xlu1 %19  }
  0x76   :  { %11 = vst.msk [vmem:[#allocation0 + $0x1] ss:$4 sm:$0xff] %vm4_vm0, %v8_v1   ;;  %23 = vst.msk [vmem:[#allocation0 + $0x3] ss:$4 sm:$0xff] %vm4_vm0, %v20_v2  }
  0x79   :  { %v14_v3 = vpop.permute.xlu0 %13  }
  0x7a   :  { %17 = vst.msk [vmem:[#allocation0 + $0x2] ss:$4 sm:$0xff] %vm4_vm0, %v14_v3  }
  0x7b   :  { %49 = shalt.err (!%p46_p4)
}
  0x7c   :  { %31 = dma.vmem_to_hbm [thread:$0]  %s29_s11, 512, %s85_s1, [#allocation1]  }
  0x7d   :  { %58 = dma.done.wait [#allocation1], 512  }
  0x7e   :  { %59 = vsyncadd [#allocation1], 4294966784 }
  0x7f   :  { %33 = vsyncpa [#allocation1], 1 }

// kernel: _encoder_forward_impl.1
= control target key start
LH: loop header
LB: loop body
LE: loop exit
PB: predicated region body
PF: predicated region fallthrough
CT: control target
= control target key end

     0   :  { %v622_v0 = vmov 0   ;;  %v623_v8 = vmov 1   ;;  %v624_v12 = vmov 2   ;;  %v625_v13 = vmov 3   ;;  %s628_s20 = smov 64   ;;  %s629_s21 = smov 96   ;;  %s745_s0 = inlined_call_operand.vmem [shape: s32[16,4], index: 0, kind: input, shape index: {}]   ;;  %s746_s1 = inlined_call_operand.vmem [shape: f32[32,32], index: 1, kind: input, shape index: {}]   ;;  %s747_s2 = inlined_call_operand.vmem [shape: f32[16,128], index: 2, kind: output, shape index: {}]  }
   0x1   :  { %611 = vset.pattern.permute.xlu1 %v622_v0  ;;  %610 = vset.pattern.permute.xlu0 %v622_v0  ;;  %v648_v1 = vld [vmem:[%s745_s0 + $0x8] sm:$0xff]  ;;  %v11_v2 = vld [vmem:[%s745_s0] sm:$0xff]  ;;  %v658_v5 = vld [vmem:[%s746_s1 + $0x18] sm:$0xff]  ;;  %v17_v14 = vlaneseq  ;;  %vm59_vm8 = vcmask 261120   ;;  %v626_v22 = vmov 0.0  }
   0x2   :  { %23 = vperm.xlu1 %611, %v648_v1   ;;  %20 = vperm.xlu0 %610, %v11_v2   ;;  %vm28_vm0 = vcmp.ge.s32.totalorder %v648_v1, 0  ;;  %vm27_vm1 = vcmp.ge.s32.totalorder %v11_v2, 0  ;;  %vm41_vm2 = vcmp.lt.s32.totalorder %v11_v2, 32  ;;  %v664_v7 = vld [vmem:[%s746_s1 + $0x10] sm:$0xff]  ;;  %vm42_vm3 = vcmp.lt.s32.totalorder %v648_v1, 32  ;;  %v675_v9 = vld [vmem:[%s746_s1 + $0x8] sm:$0xff] }
   0x3   :  { %v30_v3 = vsel %vm28_vm0, 1, %v622_v0  ;;  %v29_v4 = vsel %vm27_vm1, 1, %v622_v0  ;;  %v43_v6 = vsel %vm41_vm2, 1, %v622_v0  ;;  %558 = vmatprep.subr.mxu0 %v658_v5  ;;  %569 = vmatprep.subr.mxu1 %v658_v5  ;;  %v682_v10 = vld [vmem:[%s746_s1] sm:$0xff]  ;;  %v44_v11 = vsel %vm42_vm3, 1, %v622_v0  ;;  %s627_s1 = smov 32  }
   0x4   :  { %559 = vmatpush3.msra.mxu0 %v658_v5  ;;  %570 = vmatpush3.msra.mxu1 %v658_v5  ;;  %v697_v17 = vand.u32 127, %v17_v14 }
   0x5   :  { %560 = vmatprep.subr.mxu0 %v664_v7  ;;  %571 = vmatprep.subr.mxu1 %v664_v7 }
   0x6   :  { %35 = vperm.xlu1 %611, %v30_v3   ;;  %32 = vperm.xlu0 %610, %v29_v4  }
   0x7   :  { %561 = vmatpush3.msra.mxu0 %v664_v7  ;;  %572 = vmatpush3.msra.mxu1 %v664_v7 }
   0x8   :  { %562 = vmatprep.subr.mxu0 %v675_v9  ;;  %573 = vmatprep.subr.mxu1 %v675_v9 }
   0x9   :  { %563 = vmatpush3.msra.mxu0 %v675_v9  ;;  %574 = vmatpush3.msra.mxu1 %v675_v9 }
   0xa   :  { %612 = vset.pattern.permute.xlu1 %v623_v8  ;;  %46 = vperm.xlu0 %610, %v43_v6  }
   0xb   :  { %142 = vperm.xlu1 %612, %v11_v2   ;;  %564 = vmatprep.subr.mxu0 %v682_v10 }
   0xc   :  { %565 = vmatpush3.msra.mxu0 %v682_v10  ;;  %575 = vmatprep.subr.mxu1 %v682_v10 }
   0xd   :  { %580 = vmatprep.subr.mxu0 %v658_v5  ;;  %576 = vmatpush3.msra.mxu1 %v682_v10 }
   0xe   :  { %613 = vset.pattern.permute.xlu0 %v623_v8  ;;  %591 = vmatprep.subr.mxu1 %v658_v5 }
   0xf   :  { %614 = vset.pattern.permute.xlu1 %v622_v0  ;;  %150 = vperm.xlu0 %613, %v29_v4  }
  0x10   :  { %49 = vperm.xlu1 %614, %v44_v11  }
  0x13   :  { %153 = vperm.xlu0 %613, %v30_v3  }
  0x14   :  { %615 = vset.pattern.permute.xlu1 %v623_v8 }
  0x15   :  { %145 = vperm.xlu1 %615, %v648_v1  }
  0x17   :  { %163 = vperm.xlu0 %613, %v44_v11  }
  0x19   :  { %160 = vperm.xlu1 %615, %v43_v6  }
  0x1b   :  { %617 = vset.pattern.permute.xlu0 %v624_v12 }
  0x1c   :  { %263 = vperm.xlu0 %617, %v29_v4  }
  0x1d   :  { %616 = vset.pattern.permute.xlu1 %v624_v12 }
  0x1e   :  { %255 = vperm.xlu1 %616, %v11_v2  }
  0x20   :  { %273 = vperm.xlu0 %617, %v43_v6  }
  0x22   :  { %258 = vperm.xlu1 %616, %v648_v1  }
  0x24   :  { %619 = vset.pattern.permute.xlu0 %v625_v13 }
  0x25   :  { %376 = vperm.xlu0 %619, %v29_v4  }
  0x26   :  { %266 = vperm.xlu1 %616, %v30_v3  }
  0x29   :  { %379 = vperm.xlu0 %619, %v30_v3  }
  0x2a   :  { %618 = vset.pattern.permute.xlu1 %v625_v13 }
  0x2b   :  { %368 = vperm.xlu1 %618, %v11_v2  }
  0x2d   :  { %389 = vperm.xlu0 %619, %v44_v11  }
  0x2f   :  { %620 = vset.pattern.permute.xlu1 %v624_v12 }
  0x30   :  { %276 = vperm.xlu1 %620, %v44_v11  }
  0x34   :  { %621 = vset.pattern.permute.xlu1 %v625_v13 }
  0x35   :  { %371 = vperm.xlu1 %621, %v648_v1  }
  0x39   :  { %386 = vperm.xlu1 %621, %v43_v6  }
  0x7d   :  { %v24_v15 = vpop.permute.xlu1 %23  ;;  %v21_v16 = vpop.permute.xlu0 %20 }
  0x7e   :  { %vm25_vm4 = vcmp.eq.s32.totalorder %v697_v17, %v21_v16  ;;  %vm26_vm11 = vcmp.eq.s32.totalorder %v697_v17, %v24_v15 }
  0x81   :  { %v36_v18 = vpop.permute.xlu1 %35  ;;  %v33_v19 = vpop.permute.xlu0 %32 }
  0x82   :  { %vm37_vm5 = vcmp.eq.s32.totalorder %v33_v19, 1  ;;  %vm38_vm10 = vcmp.eq.s32.totalorder %v36_v18, 1 }
  0x83   :  { %vm39_vm6 = vmand %vm25_vm4, %vm37_vm5 }
  0x84   :  { %vm40_vm12 = vmand %vm26_vm11, %vm38_vm10 }
  0x85   :  { %v47_v20 = vpop.permute.xlu0 %46 }
  0x86   :  { %v143_v21 = vpop.permute.xlu1 %142  ;;  %vm51_vm7 = vcmp.eq.s32.totalorder %v47_v20, 1 }
  0x87   :  { %vm53_vm9 = vmand %vm39_vm6, %vm51_vm7  ;;  %vm147_vm3 = vcmp.eq.s32.totalorder %v697_v17, %v143_v21 }
  0x88   :  { %v518_v23 = vsel %vm53_vm9, 1.0, %v626_v22 }
  0x89   :  { %566 = vmatprep.mubr.msk.f32.mxu0 %vm59_vm8, %v518_v23 }
  0x8a   :  { %v151_v24 = vpop.permute.xlu0 %150 }
  0x8b   :  { %v50_v25 = vpop.permute.xlu1 %49  ;;  %vm155_vm0 = vcmp.eq.s32.totalorder %v151_v24, 1 }
  0x8c   :  { %vm52_vm13 = vcmp.eq.s32.totalorder %v50_v25, 1  ;;  %vm157_vm5 = vmand %vm147_vm3, %vm155_vm0 }
  0x8d   :  { %vm54_vm14 = vmand %vm40_vm12, %vm52_vm13 }
  0x8e   :  { %v519_v26 = vsel %vm54_vm14, 1.0, %v626_v22  ;;  %v154_v27 = vpop.permute.xlu0 %153 }
  0x8f   :  { %vm156_vm15 = vcmp.eq.s32.totalorder %v154_v27, 1  ;;  %567 = vmatmul.mubr.msk.f32.vlgmr.msra.gmra.mxu0 %vm59_vm8, %v519_v26 }
  0x90   :  { %v146_v28 = vpop.permute.xlu1 %145  ;;  %581 = vmatpush3.msra.mxu0 %v658_v5 }
  0x91   :  { %vm148_vm1 = vcmp.eq.s32.totalorder %v697_v17, %v146_v28  ;;  %582 = vmatprep.subr.mxu0 %v664_v7 }
  0x92   :  { %vm158_vm2 = vmand %vm148_vm1, %vm156_vm15  ;;  %v164_v29 = vpop.permute.xlu0 %163  ;;  %583 = vmatpush3.msra.mxu0 %v664_v7 }
  0x93   :  { %vm166_vm4 = vcmp.eq.s32.totalorder %v164_v29, 1  ;;  %584 = vmatprep.subr.mxu0 %v675_v9 }
  0x94   :  { %v161_v30 = vpop.permute.xlu1 %160  ;;  %585 = vmatpush3.msra.mxu0 %v675_v9  ;;  %vm168_vm6 = vmand %vm158_vm2, %vm166_vm4 }
  0x95   :  { %vm165_vm7 = vcmp.eq.s32.totalorder %v161_v30, 1  ;;  %586 = vmatprep.subr.mxu0 %v682_v10  ;;  %v523_v33 = vsel %vm168_vm6, 1.0, %v626_v22 }
  0x96   :  { %vm167_vm9 = vmand %vm157_vm5, %vm165_vm7  ;;  %587 = vmatpush3.msra.mxu0 %v682_v10 }
  0x97   :  { %v264_v31 = vpop.permute.xlu0 %263  ;;  %v522_v32 = vsel %vm167_vm9, 1.0, %v626_v22 }
  0x98   :  { %vm268_vm10 = vcmp.eq.s32.totalorder %v264_v31, 1  ;;  %577 = vmatprep.mubr.msk.f32.mxu1 %vm59_vm8, %v522_v32 }
  0x99   :  { %v256_v34 = vpop.permute.xlu1 %255  ;;  %578 = vmatmul.mubr.msk.f32.vlgmr.msra.gmra.mxu1 %vm59_vm8, %v523_v33 }
  0x9a   :  { %vm260_vm11 = vcmp.eq.s32.totalorder %v697_v17, %v256_v34  ;;  %592 = vmatpush3.msra.mxu1 %v658_v5 }
  0x9b   :  { %vm270_vm12 = vmand %vm260_vm11, %vm268_vm10  ;;  %v274_v35 = vpop.permute.xlu0 %273  ;;  %593 = vmatprep.subr.mxu1 %v664_v7 }
  0x9c   :  { %vm278_vm13 = vcmp.eq.s32.totalorder %v274_v35, 1  ;;  %594 = vmatpush3.msra.mxu1 %v664_v7 }
  0x9d   :  { %vm280_vm14 = vmand %vm270_vm12, %vm278_vm13  ;;  %v259_v36 = vpop.permute.xlu1 %258  ;;  %595 = vmatprep.subr.mxu1 %v675_v9 }
  0x9e   :  { %v526_v37 = vsel %vm280_vm14, 1.0, %v626_v22  ;;  %596 = vmatpush3.msra.mxu1 %v675_v9  ;;  %vm261_vm0 = vcmp.eq.s32.totalorder %v697_v17, %v259_v36 }
  0x9f   :  { %588 = vmatprep.mubr.msk.f32.mxu0 %vm59_vm8, %v526_v37  ;;  %597 = vmatprep.subr.mxu1 %v682_v10 }
  0xa0   :  { %598 = vmatpush3.msra.mxu1 %v682_v10  ;;  %v377_v39 = vpop.permute.xlu0 %376 }
  0xa1   :  { %v267_v38 = vpop.permute.xlu1 %266  ;;  %vm381_vm4 = vcmp.eq.s32.totalorder %v377_v39, 1 }
  0xa2   :  { %vm269_vm15 = vcmp.eq.s32.totalorder %v267_v38, 1 }
  0xa3   :  { %vm271_vm1 = vmand %vm261_vm0, %vm269_vm15  ;;  %vm506_vm15 = vcmask 523264   ;;  %vm509_vm0 = vcmask 785408  }
  0xa4   :  { %v380_v41 = vpop.permute.xlu0 %379 }
  0xa5   :  { %vm382_vm6 = vcmp.eq.s32.totalorder %v380_v41, 1 }
  0xa6   :  { %v369_v40 = vpop.permute.xlu1 %368 }
  0xa7   :  { %vm373_vm5 = vcmp.eq.s32.totalorder %v697_v17, %v369_v40 }
  0xa8   :  { %v390_v45 = vpop.permute.xlu0 %389  ;;  %vm383_vm10 = vmand %vm373_vm5, %vm381_vm4 }
  0xa9   :  { %vm392_vm11 = vcmp.eq.s32.totalorder %v390_v45, 1 }
  0xab   :  { %v277_v42 = vpop.permute.xlu1 %276 }
  0xac   :  { %vm279_vm2 = vcmp.eq.s32.totalorder %v277_v42, 1 }
  0xad   :  { %vm281_vm3 = vmand %vm271_vm1, %vm279_vm2 }
  0xae   :  { %v527_v43 = vsel %vm281_vm3, 1.0, %v626_v22 }
  0xaf   :  { %589 = vmatmul.mubr.msk.f32.vlgmr.msra.gmra.mxu0 %vm59_vm8, %v527_v43 }
  0xb0   :  { %v372_v44 = vpop.permute.xlu1 %371 }
  0xb1   :  { %vm374_vm7 = vcmp.eq.s32.totalorder %v697_v17, %v372_v44 }
  0xb2   :  { %vm384_vm9 = vmand %vm374_vm7, %vm382_vm6 }
  0xb3   :  { %vm394_vm12 = vmand %vm384_vm9, %vm392_vm11 }
  0xb4   :  { %v387_v46 = vpop.permute.xlu1 %386  ;;  %v531_v48 = vsel %vm394_vm12, 1.0, %v626_v22 }
  0xb5   :  { %vm391_vm13 = vcmp.eq.s32.totalorder %v387_v46, 1 }
  0xb6   :  { %vm393_vm14 = vmand %vm383_vm10, %vm391_vm13 }
  0xb7   :  { %v530_v47 = vsel %vm393_vm14, 1.0, %v626_v22 }
  0xb8   :  { %599 = vmatprep.mubr.msk.f32.mxu1 %vm59_vm8, %v530_v47 }
  0xb9   :  { %600 = vmatmul.mubr.msk.f32.vlgmr.msra.gmra.mxu1 %vm59_vm8, %v531_v48 }
 0x14f   :  { %v568_v51 = vpop.f32.mrf.mxu0 }
 0x151   :  { %v132_v52 = vpop.f32.mrf.mxu0 }
 0x159   :  { %v579_v49 = vpop.f32.mrf.mxu1 }
 0x15a   :  { %484 = vrot.lane.b32.xlu0 %v579_v49, %s627_s1 }
 0x15b   :  { %v245_v50 = vpop.f32.mrf.mxu1 }
 0x15c   :  { %482 = vrot.lane.b32.xlu1 %v245_v50, %s627_s1 }
 0x16f   :  { %v590_v53 = vpop.f32.mrf.mxu0 }
 0x170   :  { %492 = vrot.lane.b32.xlu0 %v590_v53, %s628_s20 }
 0x171   :  { %v358_v54 = vpop.f32.mrf.mxu0 }
 0x172   :  { %490 = vrot.lane.b32.xlu1 %v358_v54, %s628_s20 }
 0x179   :  { %v601_v55 = vpop.f32.mrf.mxu1 }
 0x17a   :  { %500 = vrot.lane.b32.xlu0 %v601_v55, %s629_s21 }
 0x17b   :  { %v471_v56 = vpop.f32.mrf.mxu1 }
 0x17c   :  { %498 = vrot.lane.b32.xlu1 %v471_v56, %s629_s21 }
 0x1cc   :  { %v485_v57 = vpop.permute.xlu0 %484 }
 0x1cd   :  { %v505_v61 = vsel %vm59_vm8, %v568_v51, %v485_v57 }
 0x1ce   :  { %v483_v58 = vpop.permute.xlu1 %482 }
 0x1cf   :  { %v504_v0 = vsel %vm59_vm8, %v132_v52, %v483_v58 }
 0x1e2   :  { %v493_v59 = vpop.permute.xlu0 %492 }
 0x1e3   :  { %v508_v62 = vsel %vm506_vm15, %v505_v61, %v493_v59 }
 0x1e4   :  { %v491_v60 = vpop.permute.xlu1 %490 }
 0x1e5   :  { %v507_v2 = vsel %vm506_vm15, %v504_v0, %v491_v60 }
 0x1ec   :  { %v501_v63 = vpop.permute.xlu0 %500 }
 0x1ed   :  { %v511_v1 = vsel %vm509_vm0, %v508_v62, %v501_v63 }
 0x1ee   :  { %513 = vst [vmem:[%s747_s2 + $0x8] sm:$0xff] %v511_v1  ;;  %v499_v3 = vpop.permute.xlu1 %498 }
 0x1ef   :  { %v510_v4 = vsel %vm509_vm0, %v507_v2, %v499_v3 }
 0x1f0   :  { %512 = vst [vmem:[%s747_s2] sm:$0xff] %v510_v4 }

</bundles_post_ra>
